<compile_context>
chip_gen: v7x
topology: tpu7x:2x2x1
jax: 0.10.0
libtpu: 0.0.40
codegen_flags: <defaults>
</compile_context>

<pallas_src>
import jax
import jax.numpy as jnp
from jax.experimental import pallas as pl
from jax.experimental.pallas import tpu as pltpu

_NEG_SLOPE = 0.2  # nn.LeakyReLU(negative_slope=0.2) used in Critic.forward


def _leaky_relu(x, slope=_NEG_SLOPE):
    return jnp.where(x > 0, x, slope * x)


# --------------------------------------------------------------------------- #
# Kernel
# --------------------------------------------------------------------------- #
def _make_critic_kernel(act_dtype):
    """Kernel factory; `act_dtype` is the dtype used for activation (VPU) math."""

    def kernel(sa_ref, w16_ref, w27_ref, w38_ref, whead_ref, bias_ref, out_ref):
        f32 = jnp.float32
        cdt = w16_ref.dtype  # bf16 MXU-input dtype

        # Bias slab layout (all segments start on a 128-lane boundary):
        #   [0:256]   fused layer-1 bias   (b1 | b6)
        #   [256:384] block-diag layer-2   (b2 | b7)
        #   [384:448] block-diag layer-3   (b3 | b8)
        #   [512:640] head bias            (b4 at lane 0, b9 at lane 1, rest 0)
        b16 = bias_ref[:, 0:256]
        b27 = bias_ref[:, 256:384]
        b38 = bias_ref[:, 384:448]
        bh = bias_ref[:, 512:640]

        # Layer 1: both branches fused into one N=256 matmul (single MXU pass).
        z = jnp.dot(sa_ref[...], w16_ref[...], preferred_element_type=f32) + b16
        h = _leaky_relu(z.astype(act_dtype))

        # Layer 2: block-diagonal 256 -> 128 (64 | 64 per branch).
        z = jnp.dot(h.astype(cdt), w27_ref[...], preferred_element_type=f32) + b27
        h = _leaky_relu(z.astype(act_dtype))

        # Layer 3: block-diagonal 128 -> 64 (32 | 32 per branch).
        z = jnp.dot(h.astype(cdt), w38_ref[...], preferred_element_type=f32) + b38
        h = _leaky_relu(z.astype(act_dtype))

        # Head: [64,128] matmul; cols 0/1 are q1/q2, rest zero -> the store is
        # a full, lane-dense 128-lane tile (unmasked vst).
        q = jnp.dot(h.astype(cdt), whead_ref[...], preferred_element_type=f32) + bh
        out_ref[...] = q.astype(out_ref.dtype)

    return kernel


# --------------------------------------------------------------------------- #
# Generation-aware tiling helpers
# --------------------------------------------------------------------------- #
def _num_tensorcores():
    """TensorCores one pallas_call can address via a 'parallel' grid axis."""
    try:
        dev = jax.devices()[0]
        nc = getattr(dev, "num_cores", None)
        if isinstance(nc, int) and 1 <= nc <= 8:
            return nc
        kind = getattr(dev, "device_kind", "").lower()
        if "v7" in kind or "7x" in kind:
            return 2  # v7x: 2 TensorCores per chip
        if "v4" in kind or "v5p" in kind:
            return 2  # megacore chips
    except Exception:
        pass
    return 1  # v2/v3/v5e/v6e: one TensorCore per device


def _act_dtype():
    """bf16 activation math only on chips with a bf16 VPU (v6e / v7x)."""
    try:
        kind = jax.devices()[0].device_kind.lower()
    except Exception:
        kind = ""
    if any(t in kind for t in ("v2", "v3", "v4", "v5")):
        return jnp.float32
    return jnp.bfloat16


def _choose_tb(B, n_tc=None, cap=1024):
    """One grid step per TensorCore when it fits; tile the batch at `cap` otherwise."""
    if n_tc is None:
        n_tc = _num_tensorcores()
    per_core = -(-B // n_tc)            # ceil(B / n_tc)
    per_core = -(-per_core // 16) * 16  # round up to the bf16 sublane tile
    return min(per_core, cap)


# --------------------------------------------------------------------------- #
# Wrapper
# --------------------------------------------------------------------------- #
def critic_forward(state, action, packed, *, tb=None):
    """Pallas-backed Critic.forward: returns (q1, q2), each [batch, 1] f32."""
    cdt = packed["w16"].dtype
    sa = jnp.concatenate([state, action], axis=1).astype(cdt)  # [B, din] bf16
    B, din = sa.shape

    if tb is None:
        tb = _choose_tb(B)
    n_steps = -(-B // tb)
    Bp = n_steps * tb
    if Bp != B:
        sa = jnp.pad(sa, ((0, Bp - B), (0, 0)))

    w16, w27, w38, whead, bias = (
        packed[k] for k in ("w16", "w27", "w38", "whead", "bias")
    )

    out = pl.pallas_call(
        _make_critic_kernel(_act_dtype()),
        out_shape=jax.ShapeDtypeStruct((Bp, 128), jnp.float32),
        grid_spec=pltpu.PrefetchScalarGridSpec(
            num_scalar_prefetch=0,
            grid=(n_steps,),
            in_specs=[
                pl.BlockSpec((tb, din), lambda i: (i, 0)),
                pl.BlockSpec(w16.shape, lambda i: (0, 0)),
                pl.BlockSpec(w27.shape, lambda i: (0, 0)),
                pl.BlockSpec(w38.shape, lambda i: (0, 0)),
                pl.BlockSpec(whead.shape, lambda i: (0, 0)),
                pl.BlockSpec(bias.shape, lambda i: (0, 0)),
            ],
            out_specs=pl.BlockSpec((tb, 128), lambda i: (i, 0)),
        ),
        compiler_params=pltpu.CompilerParams(
            dimension_semantics=("parallel",),
        ),
    )(sa, w16, w27, w38, whead, bias)

    out = out[:B]
    return out[:, 0:1], out[:, 1:2]


# --------------------------------------------------------------------------- #
# Parameter init (mirrors Critic._init_weights) and packing
# --------------------------------------------------------------------------- #
def init_critic_params(key, state_dim, action_dim):
    """Hidden layers: kaiming_normal (fan_in, nonlinearity='leaky_relu', a=0 ->
    gain=sqrt(2)), bias=0.1.  Output layers l4/l9: U(-0.01, 0.01) for weight
    and bias.  Weights stored [in, out] (transposed from torch's [out, in])."""
    din = state_dim + action_dim
    dims = {
        "1": (din, 128), "2": (128, 64), "3": (64, 32), "4": (32, 1),
        "6": (din, 128), "7": (128, 64), "8": (64, 32), "9": (32, 1),
    }
    gain = 2.0 ** 0.5
    params = {}
    keys = jax.random.split(key, 2 * len(dims))
    for idx, (name, (fan_in, fan_out)) in enumerate(dims.items()):
        wkey, bkey = keys[2 * idx], keys[2 * idx + 1]
        if name in ("4", "9"):
            w = jax.random.uniform(wkey, (fan_in, fan_out), jnp.float32, -0.01, 0.01)
            b = jax.random.uniform(bkey, (1, fan_out), jnp.float32, -0.01, 0.01)
        else:
            std = gain / (fan_in ** 0.5)
            w = std * jax.random.normal(wkey, (fan_in, fan_out), jnp.float32)
            b = jnp.full((1, fan_out), 0.1, jnp.float32)
        params[f"w{name}"] = w
        params[f"b{name}"] = b
    return params


def _block_diag(a, b):
    ka, na = a.shape
    kb, nb = b.shape
    top = jnp.concatenate([a, jnp.zeros((ka, nb), a.dtype)], axis=1)
    bot = jnp.concatenate([jnp.zeros((kb, na), b.dtype), b], axis=1)
    return jnp.concatenate([top, bot], axis=0)


def pack_critic_params(params, compute_dtype=jnp.bfloat16):
    """Pack per-layer params into the fused / block-diagonal kernel layout."""
    w16 = jnp.concatenate([params["w1"], params["w6"]], axis=1)   # [din, 256]
    w27 = _block_diag(params["w2"], params["w7"])                 # [256, 128]
    w38 = _block_diag(params["w3"], params["w8"])                 # [128, 64]

    whead = jnp.zeros((64, 128), jnp.float32)                     # [64, 128]
    whead = whead.at[:32, 0].set(params["w4"][:, 0])
    whead = whead.at[32:, 1].set(params["w9"][:, 0])

    bias = jnp.zeros((1, 640), jnp.float32)                       # [1, 640]
    bias = bias.at[:, 0:256].set(jnp.concatenate([params["b1"], params["b6"]], axis=1))
    bias = bias.at[:, 256:384].set(jnp.concatenate([params["b2"], params["b7"]], axis=1))
    bias = bias.at[:, 384:448].set(jnp.concatenate([params["b3"], params["b8"]], axis=1))
    bias = bias.at[:, 512:514].set(jnp.concatenate([params["b4"], params["b9"]], axis=1))

    return {
        "w16": w16.astype(compute_dtype),
        "w27": w27.astype(compute_dtype),
        "w38": w38.astype(compute_dtype),
        "whead": whead.astype(compute_dtype),
        "bias": bias,  # f32
    }


# --------------------------------------------------------------------------- #
# Plain-JAX f32 reference for correctness checking
# --------------------------------------------------------------------------- #
def critic_reference(state, action, params):
    sa = jnp.concatenate([state, action], axis=1).astype(jnp.float32)

    def branch(idx):
        h = sa
        for j in idx[:-1]:
            h = _leaky_relu(h @ params[f"w{j}"] + params[f"b{j}"])
        j = idx[-1]
        return h @ params[f"w{j}"] + params[f"b{j}"]

    return branch("1234"), branch("6789")


if __name__ == "__main__":
    state_dim, action_dim, batch = 12, 4, 64

    key = jax.random.PRNGKey(0)
    pkey, skey, akey = jax.random.split(key, 3)

    params = init_critic_params(pkey, state_dim, action_dim)
    packed = pack_critic_params(params)
    state = jax.random.normal(skey, (batch, state_dim), jnp.float32)
    action = jax.random.normal(akey, (batch, action_dim), jnp.float32)

    q1, q2 = critic_forward(state, action, packed)
    q1, q2 = jax.block_until_ready((q1, q2))

    r1, r2 = critic_reference(state, action, params)
    assert q1.shape == (batch, 1) and q2.shape == (batch, 1)
    # bf16 weights / activations with f32 accumulation -> loose tolerances.
    assert jnp.allclose(q1, r1, atol=2e-2, rtol=2e-2), float(jnp.max(jnp.abs(q1 - r1)))
    assert jnp.allclose(q2, r2, atol=2e-2, rtol=2e-2), float(jnp.max(jnp.abs(q2 - r2)))

    print("KERNEL_OK")
</pallas_src>

<mosaic_0001>
module attributes {stable_mosaic.version = 11 : i64} {
  func.func @kernel(%arg0: i32, %arg1: memref<64x16xbf16, #tpu.memory_space<vmem>>, %arg2: memref<16x256xbf16, #tpu.memory_space<vmem>>, %arg3: memref<256x128xbf16, #tpu.memory_space<vmem>>, %arg4: memref<128x64xbf16, #tpu.memory_space<vmem>>, %arg5: memref<64x128xbf16, #tpu.memory_space<vmem>>, %arg6: memref<1x640xf32, #tpu.memory_space<vmem>>, %arg7: memref<64x128xf32, #tpu.memory_space<vmem>>) attributes {dimension_semantics = [#tpu.dimension_semantics<parallel>], iteration_bounds = array<i64: 1>, scalar_prefetch = 0 : i64, scratch_operands = 0 : i64, tpu.core_type = #tpu.core_type<tc>, window_params = [{transform_indices = @transform_0, window_bounds = array<i64: 64, 16>}, {pipeline_mode = #tpu.pipeline_mode<synchronous>, transform_indices = @transform_1, window_bounds = array<i64: 16, 256>}, {pipeline_mode = #tpu.pipeline_mode<synchronous>, transform_indices = @transform_2, window_bounds = array<i64: 256, 128>}, {pipeline_mode = #tpu.pipeline_mode<synchronous>, transform_indices = @transform_3, window_bounds = array<i64: 128, 64>}, {pipeline_mode = #tpu.pipeline_mode<synchronous>, transform_indices = @transform_4, window_bounds = array<i64: 64, 128>}, {pipeline_mode = #tpu.pipeline_mode<synchronous>, transform_indices = @transform_5, window_bounds = array<i64: 1, 640>}, {transform_indices = @transform_6, window_bounds = array<i64: 64, 128>}]} {
    %c0 = arith.constant 0 : index
    %c0_0 = arith.constant 0 : index
    %0 = vector.load %arg6[%c0, %c0_0] : memref<1x640xf32, #tpu.memory_space<vmem>>, vector<1x256xf32>
    %c0_1 = arith.constant 0 : index
    %c256 = arith.constant 256 : index
    %1 = vector.load %arg6[%c0_1, %c256] : memref<1x640xf32, #tpu.memory_space<vmem>>, vector<1x128xf32>
    %c0_2 = arith.constant 0 : index
    %c384 = arith.constant 384 : index
    %2 = vector.load %arg6[%c0_2, %c384] : memref<1x640xf32, #tpu.memory_space<vmem>>, vector<1x64xf32>
    %c0_3 = arith.constant 0 : index
    %c512 = arith.constant 512 : index
    %3 = vector.load %arg6[%c0_3, %c512] : memref<1x640xf32, #tpu.memory_space<vmem>>, vector<1x128xf32>
    %c0_4 = arith.constant 0 : index
    %c0_5 = arith.constant 0 : index
    %4 = vector.load %arg1[%c0_4, %c0_5] : memref<64x16xbf16, #tpu.memory_space<vmem>>, vector<64x16xbf16>
    %c0_6 = arith.constant 0 : index
    %c0_7 = arith.constant 0 : index
    %5 = vector.load %arg2[%c0_6, %c0_7] : memref<16x256xbf16, #tpu.memory_space<vmem>>, vector<16x256xbf16>
    %cst = arith.constant dense<0.000000e+00> : vector<64x256xf32>
    %6 = tpu.matmul %4, %5, %cst {dimension_numbers = #tpu.dot_dimension_numbers<[1], [0], [0], [1], [0, 0, 1, 1], [], []>} : vector<64x16xbf16>, vector<16x256xbf16>, vector<64x256xf32> -> vector<64x256xf32>
    %7 = vector.broadcast %0 : vector<1x256xf32> to vector<64x256xf32>
    %8 = arith.addf %6, %7 : vector<64x256xf32>
    %9 = arith.truncf %8 : vector<64x256xf32> to vector<64x256xbf16>
    %cst_8 = arith.constant 0.000000e+00 : bf16
    %10 = vector.broadcast %cst_8 : bf16 to vector<64x256xbf16>
    %11 = arith.cmpf ogt, %9, %10 : vector<64x256xbf16>
    %cst_9 = arith.constant 2.001950e-01 : bf16
    %12 = vector.broadcast %cst_9 : bf16 to vector<64x256xbf16>
    %13 = arith.mulf %12, %9 : vector<64x256xbf16>
    %14 = arith.select %11, %9, %13 : vector<64x256xi1>, vector<64x256xbf16>
    %c0_10 = arith.constant 0 : index
    %c0_11 = arith.constant 0 : index
    %15 = vector.load %arg3[%c0_10, %c0_11] : memref<256x128xbf16, #tpu.memory_space<vmem>>, vector<256x128xbf16>
    %cst_12 = arith.constant dense<0.000000e+00> : vector<64x128xf32>
    %16 = tpu.matmul %14, %15, %cst_12 {dimension_numbers = #tpu.dot_dimension_numbers<[1], [0], [0], [1], [0, 0, 1, 1], [], []>} : vector<64x256xbf16>, vector<256x128xbf16>, vector<64x128xf32> -> vector<64x128xf32>
    %17 = vector.broadcast %1 : vector<1x128xf32> to vector<64x128xf32>
    %18 = arith.addf %16, %17 : vector<64x128xf32>
    %19 = arith.truncf %18 : vector<64x128xf32> to vector<64x128xbf16>
    %cst_13 = arith.constant 0.000000e+00 : bf16
    %20 = vector.broadcast %cst_13 : bf16 to vector<64x128xbf16>
    %21 = arith.cmpf ogt, %19, %20 : vector<64x128xbf16>
    %cst_14 = arith.constant 2.001950e-01 : bf16
    %22 = vector.broadcast %cst_14 : bf16 to vector<64x128xbf16>
    %23 = arith.mulf %22, %19 : vector<64x128xbf16>
    %24 = arith.select %21, %19, %23 : vector<64x128xi1>, vector<64x128xbf16>
    %c0_15 = arith.constant 0 : index
    %c0_16 = arith.constant 0 : index
    %25 = vector.load %arg4[%c0_15, %c0_16] : memref<128x64xbf16, #tpu.memory_space<vmem>>, vector<128x64xbf16>
    %cst_17 = arith.constant dense<0.000000e+00> : vector<64x64xf32>
    %26 = tpu.matmul %24, %25, %cst_17 {dimension_numbers = #tpu.dot_dimension_numbers<[1], [0], [0], [1], [0, 0, 1, 1], [], []>} : vector<64x128xbf16>, vector<128x64xbf16>, vector<64x64xf32> -> vector<64x64xf32>
    %27 = vector.broadcast %2 : vector<1x64xf32> to vector<64x64xf32>
    %28 = arith.addf %26, %27 : vector<64x64xf32>
    %29 = arith.truncf %28 : vector<64x64xf32> to vector<64x64xbf16>
    %cst_18 = arith.constant 0.000000e+00 : bf16
    %30 = vector.broadcast %cst_18 : bf16 to vector<64x64xbf16>
    %31 = arith.cmpf ogt, %29, %30 : vector<64x64xbf16>
    %cst_19 = arith.constant 2.001950e-01 : bf16
    %32 = vector.broadcast %cst_19 : bf16 to vector<64x64xbf16>
    %33 = arith.mulf %32, %29 : vector<64x64xbf16>
    %34 = arith.select %31, %29, %33 : vector<64x64xi1>, vector<64x64xbf16>
    %c0_20 = arith.constant 0 : index
    %c0_21 = arith.constant 0 : index
    %35 = vector.load %arg5[%c0_20, %c0_21] : memref<64x128xbf16, #tpu.memory_space<vmem>>, vector<64x128xbf16>
    %cst_22 = arith.constant dense<0.000000e+00> : vector<64x128xf32>
    %36 = tpu.matmul %34, %35, %cst_22 {dimension_numbers = #tpu.dot_dimension_numbers<[1], [0], [0], [1], [0, 0, 1, 1], [], []>} : vector<64x64xbf16>, vector<64x128xbf16>, vector<64x128xf32> -> vector<64x128xf32>
    %37 = vector.broadcast %3 : vector<1x128xf32> to vector<64x128xf32>
    %38 = arith.addf %36, %37 : vector<64x128xf32>
    %c0_23 = arith.constant 0 : index
    %c0_24 = arith.constant 0 : index
    %39 = vector.load %arg7[%c0_23, %c0_24] : memref<64x128xf32, #tpu.memory_space<vmem>>, vector<64x128xf32>
    tpu.vector_store %arg7[%c0_23, %c0_24], %38 {strides = array<i32>} : memref<64x128xf32, #tpu.memory_space<vmem>>, vector<64x128xf32>,
    return
  }
  func.func @transform_0(%arg0: i32) -> (i32, i32) {
    %c0_i32 = arith.constant 0 : i32
    %c0_i32_0 = arith.constant 0 : i32
    return %arg0, %c0_i32 : i32, i32
  }
  func.func @transform_1(%arg0: i32) -> (i32, i32) {
    %c0_i32 = arith.constant 0 : i32
    %c0_i32_0 = arith.constant 0 : i32
    %c0_i32_1 = arith.constant 0 : i32
    return %c0_i32, %c0_i32_0 : i32, i32
  }
  func.func @transform_2(%arg0: i32) -> (i32, i32) {
    %c0_i32 = arith.constant 0 : i32
    %c0_i32_0 = arith.constant 0 : i32
    %c0_i32_1 = arith.constant 0 : i32
    return %c0_i32, %c0_i32_0 : i32, i32
  }
  func.func @transform_3(%arg0: i32) -> (i32, i32) {
    %c0_i32 = arith.constant 0 : i32
    %c0_i32_0 = arith.constant 0 : i32
    %c0_i32_1 = arith.constant 0 : i32
    return %c0_i32, %c0_i32_0 : i32, i32
  }
  func.func @transform_4(%arg0: i32) -> (i32, i32) {
    %c0_i32 = arith.constant 0 : i32
    %c0_i32_0 = arith.constant 0 : i32
    %c0_i32_1 = arith.constant 0 : i32
    return %c0_i32, %c0_i32_0 : i32, i32
  }
  func.func @transform_5(%arg0: i32) -> (i32, i32) {
    %c0_i32 = arith.constant 0 : i32
    %c0_i32_0 = arith.constant 0 : i32
    %c0_i32_1 = arith.constant 0 : i32
    return %c0_i32, %c0_i32_0 : i32, i32
  }
  func.func @transform_6(%arg0: i32) -> (i32, i32) {
    %c0_i32 = arith.constant 0 : i32
    %c0_i32_0 = arith.constant 0 : i32
    return %arg0, %c0_i32 : i32, i32
  }
}

</mosaic_0001>

<bundles_post_ra>
// kernel: tpu_custom_call.1
= control target key start
LH: loop header
LB: loop body
LE: loop exit
PB: predicated region body
PF: predicated region fallthrough
CT: control target
= control target key end

     0   :  { %11 = vsyncpa [#allocation3], 0  ;;  %s1184_s0 = inlined_call_operand.vmem [shape: bf16[64,16], index: 0, kind: input, shape index: {}]   ;;  %s1185_s1 = inlined_call_operand.hbm [shape: bf16[16,256], index: 1, kind: input, shape index: {}]   ;;  %s1186_s2 = inlined_call_operand.vmem [shape: bf16[256,128], index: 2, kind: input, shape index: {}]   ;;  %s1187_s3 = inlined_call_operand.vmem [shape: bf16[128,64], index: 3, kind: input, shape index: {}]   ;;  %s1188_s4 = inlined_call_operand.hbm [shape: bf16[64,128], index: 4, kind: input, shape index: {}]   ;;  %s1189_s5 = inlined_call_operand.vmem [shape: f32[1,640], index: 5, kind: input, shape index: {}]   ;;  %s1190_s6 = inlined_call_operand.hbm [shape: f32[64,128], index: 6, kind: output, shape index: {}]  }
   0x1   :  { %12 = vsyncpa [#allocation6], 0 }
   0x2   :  { %13 = vsyncpa [#allocation4], 0  ;;  %s995_s21 = smov [#allocation2]   ;;  %s923_s25 = scalar_lea.hbm %s1185_s1, 256 }
   0x3   :  { %s21_s22 = sshll.u32 %s995_s21, 4  ;;  %p924_p0 = scmp.ne.s32.totalorder %s1185_s1, %s923_s25  ;;  %s22_s22 = int_to_ptr.vmem [resolvable:$true] %s21_s22 }
   0x4   :  { %p927_p1 = scmp.lt.u32.totalorder %s923_s25, %s1185_s1 }
   0x6   :  { %p929_p2 = pnand %p927_p1, %p924_p0 }
   0x8   :  { %932 = shalt.err (!%p929_p2)
}
   0x9   :  { %s933_s30 = scalar_lea.vmem %s22_s22, 256  ;;  %p938_p4 = scmp.lt.s32.totalorder %s22_s22, %s22_s22 }
   0xa   :  { %p934_p3 = scmp.ne.s32.totalorder %s22_s22, %s933_s30  ;;  %p939_p5 = scmp.lt.s32.totalorder %s933_s30, %s933_s30 }
   0xc   :  { %p940_p6 = por %p939_p5, %p938_p4 }
   0xe   :  { %p941_p7 = pnand %p940_p6, %p934_p3 }
  0x10   :  { %944 = shalt.err (!%p941_p7)
}
  0x11   :  { %s996_s7 = smov 128   ;;  %s997_s8 = smov 8  }
  0x12   :  { %27 = dma.hbm_to_vmem [thread:$0]  %s1185_s1, 256, %s22_s22, [#allocation3], %s996_s7, %s996_s7, %s997_s8  }
  0x13   :  { %s998_s11 = smov [#allocation5]   ;;  %s945_s15 = scalar_lea.hbm %s1188_s4, 512 }
  0x14   :  { %s37_s12 = sshll.u32 %s998_s11, 4  ;;  %p946_p8 = scmp.ne.s32.totalorder %s1188_s4, %s945_s15  ;;  %s38_s12 = int_to_ptr.vmem [resolvable:$true] %s37_s12 }
  0x15   :  { %p949_p9 = scmp.lt.u32.totalorder %s945_s15, %s1188_s4 }
  0x17   :  { %p951_p10 = pnand %p949_p9, %p946_p8 }
  0x19   :  { %954 = shalt.err (!%p951_p10)
}
  0x1a   :  { %s955_s20 = scalar_lea.vmem %s38_s12, 512  ;;  %p960_p12 = scmp.lt.s32.totalorder %s38_s12, %s38_s12 }
  0x1b   :  { %p956_p11 = scmp.ne.s32.totalorder %s38_s12, %s955_s20  ;;  %p961_p13 = scmp.lt.s32.totalorder %s955_s20, %s955_s20 }
  0x1d   :  { %p962_p0 = por %p961_p13, %p960_p12 }
  0x1f   :  { %p963_p1 = pnand %p962_p0, %p956_p11 }
  0x21   :  { %966 = shalt.err (!%p963_p1)
}
  0x22   :  { %s999_s1 = smov 64   ;;  %s1000_s21 = smov 4  }
  0x23   :  { %43 = dma.hbm_to_vmem [thread:$0]  %s1188_s4, 512, %s38_s12, [#allocation6], %s999_s1, %s999_s1, %s1000_s21  }
  0x24   :  { %989 = dma.done.wait [#allocation3], 256  }
  0x25   :  { %990 = vsyncadd [#allocation3], 4294967040 }
  0x26   :  { %991 = dma.done.wait [#allocation6], 512  }
  0x27   :  { %992 = vsyncadd [#allocation6], 4294966784  ;;  %v1001_v0 = vmov 0   ;;  %v888_v1 = vld [vmem:[#allocation2 + $0x4] ss:$8 sps:$4 sm:$0xff]   ;;  %vm109_vm0 = vcmask 130048   ;;  %v69_v26 = vlaneseq }
  0x28   :  { %154 = vmatprep.mubr.bf16.mxu0 %v1001_v0  ;;  %v890_v2 = vld [vmem:[#allocation2] ss:$8 sps:$4 sm:$0xff]   ;;  %122 = vmatprep.subr.bf16.mxu0 %v888_v1  ;;  %v899_v9 = vld [vmem:[%s1186_s2 + $0x50] sm:$0xff]   ;;  %v901_v11 = vld [vmem:[%s1186_s2 + $0x58] sm:$0xff]   ;;  %vm631_vm15 = vcmask 523264   ;;  %s1002_s13 = smov [#allocation7]  }
  0x29   :  { %v891_v3 = vld [vmem:[%s1184_s0] sm:$0xff]   ;;  %123 = vmatpush1.bf16.msra.mxu0 %v890_v2  ;;  %v892_v6 = vld [vmem:[%s1184_s0 + $0x8] sm:$0xff]   ;;  %v900_v10 = vld [vmem:[%s1186_s2 + $0x10] sm:$0xff]   ;;  %v70_v27 = vshrl.u32 %v69_v26, 7  ;;  %s722_s14 = sshll.u32 %s1002_s13, 4  ;;  %s723_s14 = int_to_ptr.vmem [resolvable:$true] %s722_s14 }
  0x2a   :  { %v895_v4 = vld [vmem:[%s1186_s2 + $0x40] sm:$0xff]   ;;  %v897_v7 = vld [vmem:[%s1186_s2 + $0x48] sm:$0xff]   ;;  %v902_v12 = vld [vmem:[%s1186_s2 + $0x18] sm:$0xff]   ;;  %p972_p3 = scmp.lt.s32.totalorder %s723_s14, %s723_s14 }
  0x2b   :  { %v896_v5 = vld [vmem:[%s1186_s2] sm:$0xff]   ;;  %780 = vmatprep.subr.bf16.mxu1 %v895_v4  ;;  %v898_v8 = vld [vmem:[%s1186_s2 + $0x8] sm:$0xff]   ;;  %v893_v13 = vld [vmem:[%s1184_s0 + $0x10] sm:$0xff]   ;;  %v71_v28 = vsub.s32 0, %v70_v27  ;;  %v75_v30 = vsub.s32 1, %v70_v27 }
  0x2c   :  { %741 = vmatmul.mubr.msk.bf16.vlgmr.msra.gmra.mrb[0].mxu0 %vm109_vm0, %v891_v3  ;;  %781 = vmatpush3.bf16.msra.mxu1 %v896_v5  ;;  %v903_v14 = vld [vmem:[%s1186_s2 + $0x60] sm:$0xff]   ;;  %v894_v16 = vld [vmem:[%s1184_s0 + $0x18] sm:$0xff]   ;;  %v905_v17 = vld [vmem:[%s1186_s2 + $0x68] sm:$0xff]  }
  0x2d   :  { %164 = vmatprep.mubr.bf16.mxu0 %v1001_v0  ;;  %782 = vmatprep.subr.bf16.mxu1 %v897_v7  ;;  %v904_v15 = vld [vmem:[%s1186_s2 + $0x20] sm:$0xff]   ;;  %v906_v18 = vld [vmem:[%s1186_s2 + $0x28] sm:$0xff]   ;;  %v907_v19 = vld [vmem:[%s1186_s2 + $0x70] sm:$0xff]  }
  0x2e   :  { %v908_v20 = vld [vmem:[%s1186_s2 + $0x30] sm:$0xff]   ;;  %v909_v21 = vld [vmem:[%s1186_s2 + $0x78] sm:$0xff]   ;;  %v911_v23 = vld [vmem:[%s1187_s3] sm:$0xff]  }
  0x2f   :  { %v910_v22 = vld [vmem:[%s1186_s2 + $0x38] sm:$0xff]   ;;  %v912_v24 = vld [vmem:[%s1187_s3 + $0x8] sm:$0xff]   ;;  %840 = vmatprep.subr.bf16.mxu0 %v911_v23  ;;  %v913_v25 = vld [vmem:[%s1187_s3 + $0x10] sm:$0xff]  }
  0x30   :  { %783 = vmatpush3.bf16.msra.mxu1 %v898_v8  ;;  %841 = vmatpush3.bf16.msra.mxu0 %v911_v23  ;;  %v54_v29 = vld [vmem:[%s1189_s5] sm:$0x3]  ;;  %v916_v27 = vld [vmem:[%s1187_s3 + $0x28] sm:$0xff]  }
  0x31   :  { %784 = vmatprep.subr.bf16.mxu1 %v899_v9  ;;  %842 = vmatprep.subr.bf16.mxu0 %v912_v24  ;;  %v72_v31 = vrot.slane %v54_v29, %v71_v28  ;;  %v76_v33 = vrot.slane %v54_v29, %v75_v30  ;;  %v915_v26 = vld [vmem:[%s1187_s3 + $0x20] sm:$0xff]   ;;  %v917_v28 = vld [vmem:[%s1187_s3 + $0x30] sm:$0xff]   ;;  %v918_v29 = vld [vmem:[%s1187_s3 + $0x38] sm:$0xff]  }
  0x32   :  { %v919_v30 = vld [vmem:[#allocation5] sm:$0xff]  }
  0x34   :  { %742 = vmatmul.mubr.msk.bf16.gmra.mrb[4].mxu0 %vm109_vm0, %v892_v6  ;;  %785 = vmatpush3.bf16.msra.mxu1 %v900_v10 }
  0x35   :  { %174 = vmatprep.mubr.bf16.mxu0 %v1001_v0  ;;  %786 = vmatprep.subr.bf16.mxu1 %v901_v11 }
  0x36   :  { %843 = vmatpush3.bf16.msra.mxu0 %v912_v24 }
  0x37   :  { %844 = vmatprep.subr.bf16.mxu0 %v913_v25 }
  0x38   :  { %787 = vmatpush3.bf16.msra.mxu1 %v902_v12 }
  0x39   :  { %788 = vmatprep.subr.bf16.mxu1 %v903_v14 }
  0x3a   :  { %845 = vmatpush3.bf16.msra.mxu0 %v913_v25  ;;  %v914_v25 = vld [vmem:[%s1187_s3 + $0x18] sm:$0xff]  }
  0x3b   :  { %846 = vmatprep.subr.bf16.mxu0 %v914_v25 }
  0x3c   :  { %743 = vmatmul.mubr.msk.bf16.gmra.mrb[8].mxu0 %vm109_vm0, %v893_v13  ;;  %789 = vmatpush3.bf16.msra.mxu1 %v904_v15 }
  0x3d   :  { %184 = vmatprep.mubr.bf16.mxu0 %v1001_v0  ;;  %790 = vmatprep.subr.bf16.mxu1 %v905_v17 }
  0x3e   :  { %847 = vmatpush3.bf16.msra.mxu0 %v914_v25 }
  0x3f   :  { %848 = vmatprep.subr.bf16.mxu0 %v915_v26 }
  0x40   :  { %791 = vmatpush3.bf16.msra.mxu1 %v906_v18 }
  0x41   :  { %792 = vmatprep.subr.bf16.mxu1 %v907_v19 }
  0x42   :  { %849 = vmatpush3.bf16.msra.mxu0 %v915_v26 }
  0x43   :  { %850 = vmatprep.subr.bf16.mxu0 %v916_v27 }
  0x44   :  { %744 = vmatmul.mubr.msk.bf16.gmra.mrb[12].mxu0 %vm109_vm0, %v894_v16  ;;  %793 = vmatpush3.bf16.msra.mxu1 %v908_v20 }
  0x45   :  { %794 = vmatprep.subr.bf16.mxu1 %v909_v21 }
  0x46   :  { %851 = vmatpush3.bf16.msra.mxu0 %v916_v27 }
  0x47   :  { %852 = vmatprep.subr.bf16.mxu0 %v917_v28 }
  0x48   :  { %795 = vmatpush3.bf16.msra.mxu1 %v910_v22 }
  0x4a   :  { %853 = vmatpush3.bf16.msra.mxu0 %v917_v28 }
  0x4b   :  { %854 = vmatprep.subr.bf16.mxu0 %v918_v29 }
  0x4e   :  { %855 = vmatpush3.bf16.msra.mxu0 %v918_v29 }
  0x4f   :  { %864 = vmatprep.subr.bf16.mxu0 %v919_v30 }
  0xff   :  { %v156_v32 = vpop.f32.mrb[0].mxu0 }
 0x100   :  { %v158_v34 = vpop.f32.mrb[1].mxu0  ;;  %v157_v36 = vadd.f32 %v156_v32, %v72_v31 }
 0x101   :  { %v160_v35 = vpop.f32.mrb[2].mxu0  ;;  %v159_v39 = vadd.f32 %v158_v34, %v76_v33 }
 0x102   :  { %v161_v37 = vadd.f32 %v160_v35, %v72_v31  ;;  %v162_v38 = vpop.f32.mrb[3].mxu0  ;;  %v745_v35 = vld [vmem:[%s1189_s5 + $0x2] ss:$0 sm:$0xff] }
 0x103   :  { %v163_v40 = vadd.f32 %v162_v38, %v76_v33 }
 0x104   :  { %v195_v41 = vpack.c.bf16 %v161_v37, %v157_v36 }
 0x105   :  { %v196_v42 = vpack.c.bf16 %v163_v40, %v159_v39 }
 0x106   :  { %v211_v43 = vmul.bf16 1045249613, %v195_v41  ;;  %vm203_vm2 = vcmp.gt.bf16.partialorder %v195_v41, 0 }
 0x107   :  { %v166_v44 = vpop.f32.mrb[4].mxu0  ;;  %vm204_vm1 = vcmp.gt.bf16.partialorder %v196_v42, 0  ;;  %v212_v45 = vmul.bf16 1045249613, %v196_v42 }
 0x108   :  { %v168_v46 = vpop.f32.mrb[5].mxu0  ;;  %v167_v49 = vadd.f32 %v166_v44, %v72_v31  ;;  %v219_v52 = vsel %vm203_vm2, %v195_v41, %v211_v43 }
 0x109   :  { %v170_v47 = vpop.f32.mrb[6].mxu0  ;;  %v220_v48 = vsel %vm204_vm1, %v196_v42, %v212_v45  ;;  %v169_v53 = vadd.f32 %v168_v46, %v76_v33 }
 0x10a   :  { %v171_v50 = vadd.f32 %v170_v47, %v72_v31  ;;  %v172_v51 = vpop.f32.mrb[7].mxu0  ;;  %393 = vmatprep.mubr.bf16.mxu1 %v220_v48 }
 0x10b   :  { %v173_v54 = vadd.f32 %v172_v51, %v76_v33  ;;  %394 = vmatmul.mubr.bf16.vlgmr.msra.gmra.mrb[0].mxu1 %v219_v52 }
 0x10c   :  { %v197_v55 = vpack.c.bf16 %v171_v50, %v167_v49 }
 0x10d   :  { %v198_v56 = vpack.c.bf16 %v173_v54, %v169_v53 }
 0x10e   :  { %v213_v57 = vmul.bf16 1045249613, %v197_v55  ;;  %vm205_vm4 = vcmp.gt.bf16.partialorder %v197_v55, 0 }
 0x10f   :  { %v176_v58 = vpop.f32.mrb[8].mxu0  ;;  %vm206_vm3 = vcmp.gt.bf16.partialorder %v198_v56, 0  ;;  %v214_v59 = vmul.bf16 1045249613, %v198_v56 }
 0x110   :  { %v178_v60 = vpop.f32.mrb[9].mxu0  ;;  %v177_v63 = vadd.f32 %v176_v58, %v72_v31  ;;  %v221_v2 = vsel %vm205_vm4, %v197_v55, %v213_v57 }
 0x111   :  { %v180_v61 = vpop.f32.mrb[10].mxu0  ;;  %v222_v62 = vsel %vm206_vm3, %v198_v56, %v214_v59  ;;  %v179_v3 = vadd.f32 %v178_v60, %v76_v33 }
 0x112   :  { %v181_v0 = vadd.f32 %v180_v61, %v72_v31  ;;  %v182_v1 = vpop.f32.mrb[11].mxu0  ;;  %401 = vmatprep.mubr.bf16.mxu1 %v222_v62 }
 0x113   :  { %v183_v4 = vadd.f32 %v182_v1, %v76_v33  ;;  %402 = vmatmul.mubr.bf16.gmra.mrb[4].mxu1 %v221_v2 }
 0x114   :  { %v199_v5 = vpack.c.bf16 %v181_v0, %v177_v63 }
 0x115   :  { %v200_v6 = vpack.c.bf16 %v183_v4, %v179_v3 }
 0x116   :  { %v215_v7 = vmul.bf16 1045249613, %v199_v5  ;;  %vm207_vm6 = vcmp.gt.bf16.partialorder %v199_v5, 0 }
 0x117   :  { %v186_v8 = vpop.f32.mrb[12].mxu0  ;;  %vm208_vm5 = vcmp.gt.bf16.partialorder %v200_v6, 0  ;;  %v216_v9 = vmul.bf16 1045249613, %v200_v6 }
 0x118   :  { %v188_v10 = vpop.f32.mrb[13].mxu0  ;;  %v187_v13 = vadd.f32 %v186_v8, %v72_v31  ;;  %v223_v16 = vsel %vm207_vm6, %v199_v5, %v215_v7 }
 0x119   :  { %v190_v11 = vpop.f32.mrb[14].mxu0  ;;  %v224_v12 = vsel %vm208_vm5, %v200_v6, %v216_v9  ;;  %v189_v17 = vadd.f32 %v188_v10, %v76_v33 }
 0x11a   :  { %v191_v14 = vadd.f32 %v190_v11, %v72_v31  ;;  %v192_v15 = vpop.f32.mrb[15].mxu0  ;;  %409 = vmatprep.mubr.bf16.mxu1 %v224_v12  ;;  %v920_v12 = vld [vmem:[#allocation5 + $0x8] sm:$0xff]  }
 0x11b   :  { %v193_v18 = vadd.f32 %v192_v15, %v76_v33  ;;  %410 = vmatmul.mubr.bf16.gmra.mrb[8].mxu1 %v223_v16  ;;  %v762_v16 = vld [vmem:[%s1189_s5 + $0x3] ss:$0 sm:$0xff] }
 0x11c   :  { %v201_v19 = vpack.c.bf16 %v191_v14, %v187_v13  ;;  %v921_v13 = vld [vmem:[#allocation5 + $0x10] sm:$0xff]   ;;  %v922_v14 = vld [vmem:[#allocation5 + $0x18] sm:$0xff]  }
 0x11d   :  { %v202_v20 = vpack.c.bf16 %v193_v18, %v189_v17 }
 0x11e   :  { %v217_v21 = vmul.bf16 1045249613, %v201_v19  ;;  %vm209_vm8 = vcmp.gt.bf16.partialorder %v201_v19, 0 }
 0x11f   :  { %vm210_vm7 = vcmp.gt.bf16.partialorder %v202_v20, 0  ;;  %v218_v22 = vmul.bf16 1045249613, %v202_v20 }
 0x120   :  { %v225_v24 = vsel %vm209_vm8, %v201_v19, %v217_v21 }
 0x121   :  { %v226_v23 = vsel %vm210_vm7, %v202_v20, %v218_v22 }
 0x122   :  { %417 = vmatprep.mubr.bf16.mxu1 %v226_v23 }
 0x123   :  { %418 = vmatmul.mubr.bf16.gmra.mrb[12].mxu1 %v225_v24 }
 0x1de   :  { %v796_v31 = vpop.f32.mrb[0].mxu1 }
 0x1df   :  { %v797_v32 = vpop.f32.mrb[1].mxu1 }
 0x1e0   :  { %v798_v33 = vadd.f32 %v797_v32, %v796_v31  ;;  %v799_v34 = vpop.f32.mrb[2].mxu1 }
 0x1e1   :  { %v800_v36 = vpop.f32.mrb[3].mxu1 }
 0x1e2   :  { %v801_v37 = vadd.f32 %v800_v36, %v799_v34  ;;  %v396_v38 = vadd.f32 %v798_v33, %v745_v35 }
 0x1e4   :  { %v399_v39 = vadd.f32 %v801_v37, %v745_v35 }
 0x1e6   :  { %v426_v40 = vpack.c.bf16 %v399_v39, %v396_v38  ;;  %v802_v41 = vpop.f32.mrb[4].mxu1 }
 0x1e7   :  { %v803_v42 = vpop.f32.mrb[5].mxu1 }
 0x1e8   :  { %v804_v43 = vadd.f32 %v803_v42, %v802_v41  ;;  %v805_v44 = vpop.f32.mrb[6].mxu1  ;;  %vm430_vm9 = vcmp.gt.bf16.partialorder %v426_v40, 0  ;;  %v434_v45 = vmul.bf16 1045249613, %v426_v40 }
 0x1e9   :  { %v806_v46 = vpop.f32.mrb[7].mxu1 }
 0x1ea   :  { %v807_v47 = vadd.f32 %v806_v46, %v805_v44  ;;  %v438_v48 = vsel %vm430_vm9, %v426_v40, %v434_v45  ;;  %v404_v49 = vadd.f32 %v804_v43, %v745_v35  ;;  %v771_v44 = vld [vmem:[%s1189_s5 + $0x4] ss:$0 sm:$0xff]  ;;  %s967_s5 = scalar_lea.vmem %s723_s14, 1024 }
 0x1eb   :  { %856 = vmatprep.mubr.bf16.mxu0 %v438_v48  ;;  %p968_p2 = scmp.ne.s32.totalorder %s723_s14, %s967_s5  ;;  %p973_p4 = scmp.lt.s32.totalorder %s967_s5, %s967_s5 }
 0x1ec   :  { %v407_v50 = vadd.f32 %v807_v47, %v745_v35 }
 0x1ed   :  { %p974_p5 = por %p973_p4, %p972_p3 }
 0x1ee   :  { %v427_v51 = vpack.c.bf16 %v407_v50, %v404_v49  ;;  %v808_v52 = vpop.f32.mrb[8].mxu1 }
 0x1ef   :  { %v809_v53 = vpop.f32.mrb[9].mxu1  ;;  %p975_p6 = pnand %p974_p5, %p968_p2 }
 0x1f0   :  { %v435_v54 = vmul.bf16 1045249613, %v427_v51  ;;  %v810_v55 = vadd.f32 %v809_v53, %v808_v52  ;;  %v811_v56 = vpop.f32.mrb[10].mxu1  ;;  %vm431_vm10 = vcmp.gt.bf16.partialorder %v427_v51, 0 }
 0x1f1   :  { %v812_v57 = vpop.f32.mrb[11].mxu1 }
 0x1f2   :  { %v813_v58 = vadd.f32 %v812_v57, %v811_v56  ;;  %v439_v59 = vsel %vm431_vm10, %v427_v51, %v435_v54  ;;  %v412_v60 = vadd.f32 %v810_v55, %v745_v35 }
 0x1f3   :  { %857 = vmatmul.mubr.bf16.vlgmr.msra.gmra.mrb[16].mxu0 %v439_v59 }
 0x1f4   :  { %v415_v61 = vadd.f32 %v813_v58, %v745_v35  ;;  %865 = vmatpush3.bf16.msra.mxu0 %v919_v30 }
 0x1f5   :  { %866 = vmatprep.subr.bf16.mxu0 %v920_v12 }
 0x1f6   :  { %v428_v62 = vpack.c.bf16 %v415_v61, %v412_v60  ;;  %v814_v63 = vpop.f32.mrb[12].mxu1 }
 0x1f7   :  { %v815_v0 = vpop.f32.mrb[13].mxu1 }
 0x1f8   :  { %v816_v1 = vadd.f32 %v815_v0, %v814_v63  ;;  %v817_v2 = vpop.f32.mrb[14].mxu1  ;;  %vm432_vm11 = vcmp.gt.bf16.partialorder %v428_v62, 0  ;;  %v436_v3 = vmul.bf16 1045249613, %v428_v62  ;;  %867 = vmatpush3.bf16.msra.mxu0 %v920_v12 }
 0x1f9   :  { %v818_v4 = vpop.f32.mrb[15].mxu1  ;;  %868 = vmatprep.subr.bf16.mxu0 %v921_v13 }
 0x1fa   :  { %v819_v5 = vadd.f32 %v818_v4, %v817_v2  ;;  %v440_v6 = vsel %vm432_vm11, %v428_v62, %v436_v3  ;;  %v420_v7 = vadd.f32 %v816_v1, %v745_v35 }
 0x1fb   :  { %860 = vmatprep.mubr.bf16.mxu0 %v440_v6 }
 0x1fc   :  { %v423_v8 = vadd.f32 %v819_v5, %v745_v35  ;;  %869 = vmatpush3.bf16.msra.mxu0 %v921_v13 }
 0x1fd   :  { %870 = vmatprep.subr.bf16.mxu0 %v922_v14 }
 0x1fe   :  { %v429_v9 = vpack.c.bf16 %v423_v8, %v420_v7 }
 0x200   :  { %vm433_vm12 = vcmp.gt.bf16.partialorder %v429_v9, 0  ;;  %v437_v10 = vmul.bf16 1045249613, %v429_v9  ;;  %871 = vmatpush3.bf16.msra.mxu0 %v922_v14 }
 0x202   :  { %v441_v11 = vsel %vm433_vm12, %v429_v9, %v437_v10 }
 0x203   :  { %861 = vmatmul.mubr.bf16.gmra.mrb[20].mxu0 %v441_v11 }
 0x2c6   :  { %v858_v15 = vpop.f32.mrb[16].mxu0 }
 0x2c7   :  { %v546_v17 = vpop.f32.mrb[17].mxu0  ;;  %v555_v19 = vadd.f32 %v858_v15, %v762_v16 }
 0x2c8   :  { %v859_v18 = vpop.f32.mrb[18].mxu0  ;;  %v547_v22 = vadd.f32 %v762_v16, %v546_v17 }
 0x2c9   :  { %v558_v20 = vadd.f32 %v859_v18, %v762_v16  ;;  %v549_v21 = vpop.f32.mrb[19].mxu0 }
 0x2ca   :  { %v550_v23 = vadd.f32 %v762_v16, %v549_v21 }
 0x2cb   :  { %v578_v24 = vpack.c.bf16 %v558_v20, %v555_v19 }
 0x2cc   :  { %v577_v25 = vpack.c.bf16 %v550_v23, %v547_v22 }
 0x2cd   :  { %v586_v26 = vmul.bf16 1045249613, %v578_v24  ;;  %vm582_vm13 = vcmp.gt.bf16.partialorder %v578_v24, 0 }
 0x2ce   :  { %v585_v27 = vmul.bf16 1045249613, %v577_v25  ;;  %vm581_vm14 = vcmp.gt.bf16.partialorder %v577_v25, 0 }
 0x2cf   :  { %v590_v29 = vsel %vm582_vm13, %v578_v24, %v586_v26 }
 0x2d0   :  { %v589_v28 = vsel %vm581_vm14, %v577_v25, %v585_v27 }
 0x2d1   :  { %872 = vmatprep.mubr.msk.bf16.mxu0 %vm631_vm15, %v589_v28 }
 0x2d2   :  { %873 = vmatmul.mubr.msk.bf16.vlgmr.msra.gmra.mrb[24].mxu0 %vm631_vm15, %v590_v29 }
 0x2d6   :  { %v862_v30 = vpop.f32.mrb[20].mxu0 }
 0x2d7   :  { %v562_v31 = vpop.f32.mrb[21].mxu0  ;;  %v571_v33 = vadd.f32 %v862_v30, %v762_v16 }
 0x2d8   :  { %v863_v32 = vpop.f32.mrb[22].mxu0  ;;  %v563_v36 = vadd.f32 %v762_v16, %v562_v31 }
 0x2d9   :  { %v574_v34 = vadd.f32 %v863_v32, %v762_v16  ;;  %v565_v35 = vpop.f32.mrb[23].mxu0 }
 0x2da   :  { %v566_v37 = vadd.f32 %v762_v16, %v565_v35 }
 0x2db   :  { %v580_v38 = vpack.c.bf16 %v574_v34, %v571_v33 }
 0x2dc   :  { %v579_v39 = vpack.c.bf16 %v566_v37, %v563_v36 }
 0x2dd   :  { %v588_v40 = vmul.bf16 1045249613, %v580_v38  ;;  %vm584_vm1 = vcmp.gt.bf16.partialorder %v580_v38, 0 }
 0x2de   :  { %v587_v41 = vmul.bf16 1045249613, %v579_v39  ;;  %vm583_vm0 = vcmp.gt.bf16.partialorder %v579_v39, 0 }
 0x2df   :  { %v592_v43 = vsel %vm584_vm1, %v580_v38, %v588_v40 }
 0x2e0   :  { %v591_v42 = vsel %vm583_vm0, %v579_v39, %v587_v41 }
 0x2e1   :  { %876 = vmatprep.mubr.msk.bf16.mxu0 %vm631_vm15, %v591_v42 }
 0x2e2   :  { %877 = vmatmul.mubr.msk.bf16.gmra.mrb[28].mxu0 %vm631_vm15, %v592_v43 }
 0x3a5   :  { %v874_v45 = vpop.f32.mrb[24].mxu0 }
 0x3a6   :  { %v687_v46 = vadd.f32 %v874_v45, %v771_v44  ;;  %v678_v47 = vpop.f32.mrb[25].mxu0 }
 0x3a7   :  { %v679_v48 = vadd.f32 %v771_v44, %v678_v47  ;;  %v875_v49 = vpop.f32.mrb[26].mxu0 }
 0x3a8   :  { %711 = vst [vmem:[#allocation7 + $0x10] sm:$0xff] %v687_v46  ;;  %v690_v50 = vadd.f32 %v875_v49, %v771_v44  ;;  %v681_v51 = vpop.f32.mrb[27].mxu0 }
 0x3a9   :  { %709 = vst [vmem:[#allocation7] sm:$0xff] %v679_v48  ;;  %v682_v52 = vadd.f32 %v771_v44, %v681_v51 }
 0x3aa   :  { %712 = vst [vmem:[#allocation7 + $0x18] sm:$0xff] %v690_v50 }
 0x3ab   :  { %710 = vst [vmem:[#allocation7 + $0x8] sm:$0xff] %v682_v52 }
 0x3b5   :  { %v878_v53 = vpop.f32.mrb[28].mxu0 }
 0x3b6   :  { %v703_v54 = vadd.f32 %v878_v53, %v771_v44  ;;  %v694_v55 = vpop.f32.mrb[29].mxu0 }
 0x3b7   :  { %v695_v56 = vadd.f32 %v771_v44, %v694_v55  ;;  %v879_v57 = vpop.f32.mrb[30].mxu0 }
 0x3b8   :  { %715 = vst [vmem:[#allocation7 + $0x30] sm:$0xff] %v703_v54  ;;  %v706_v58 = vadd.f32 %v879_v57, %v771_v44  ;;  %v697_v59 = vpop.f32.mrb[31].mxu0 }
 0x3b9   :  { %713 = vst [vmem:[#allocation7 + $0x20] sm:$0xff] %v695_v56  ;;  %v698_v60 = vadd.f32 %v771_v44, %v697_v59 }
 0x3ba   :  { %716 = vst [vmem:[#allocation7 + $0x38] sm:$0xff] %v706_v58 }
 0x3bb   :  { %714 = vst [vmem:[#allocation7 + $0x28] sm:$0xff] %v698_v60 }
 0x3bc   :  { %978 = shalt.err (!%p975_p6)
}
 0x3bd   :  { %s979_s17 = scalar_lea.hbm %s1190_s6, 1024 }
 0x3be   :  { %p980_p7 = scmp.ne.s32.totalorder %s1190_s6, %s979_s17  ;;  %p983_p8 = scmp.lt.u32.totalorder %s979_s17, %s1190_s6 }
 0x3c0   :  { %p985_p9 = pnand %p983_p8, %p980_p7 }
 0x3c2   :  { %988 = shalt.err (!%p985_p9)
}
 0x3c3   :  { %728 = dma.vmem_to_hbm [thread:$0]  %s723_s14, 1024, %s1190_s6, [#allocation4], %s996_s7, %s996_s7, %s997_s8  }
 0x3c4   :  { %993 = dma.done.wait [#allocation4], 1024  }
 0x3c5   :  { %994 = vsyncadd [#allocation4], 4294966272 }
 0x3c6   :  { %732 = vsyncpa [#allocation3], 1 }
 0x3c7   :  { %733 = vsyncpa [#allocation6], 1 }
 0x3c8   :  { %734 = vsyncpa [#allocation4], 1 }

</bundles_post_ra>
